<compile_context>
chip_gen: v5e
topology: v5e:2x2
jax: 0.10.0
libtpu: 0.0.40
codegen_flags: <defaults>
</compile_context>

<pallas_src>
import functools

import jax
import jax.numpy as jnp
from jax import lax
from jax.experimental import pallas as pl
from jax.experimental.pallas import tpu as pltpu

_LANES = 128
_SUBLANES = 8
_ACC_ROWS = 32          # accumulator sublane depth (4 vregs of independent adds)


def _chip_config():
    """Trace-time per-generation tiling config."""
    kind = ""
    try:
        kind = jax.devices()[0].device_kind.lower()
    except Exception:  # pragma: no cover - e.g. no devices during tracing
        pass
    if "v5 lite" in kind or "v5e" in kind or "v5lite" in kind:
        # Single TC; 16 MiB scoped-VMEM default -> 2 MiB blocks are plenty at
        # ~820 GB/s (per-step overhead already ~6%).
        return dict(target_rows=4096, num_parts=1, in_buffers=2)
    if "v6" in kind:
        # Single TC; 4 MiB blocks cut per-step overhead to ~5% at ~1.35 TB/s.
        return dict(target_rows=8192, num_parts=1, in_buffers=2)
    if "7" in kind:
        # 2 TCs/chip, 3.2 TB/s HBM: split across cores, deeper buffering.
        return dict(target_rows=8192, num_parts=2, in_buffers=3)
    if "v4" in kind or "v5p" in kind:
        # Megacore (2 TCs): keep the 2-way "parallel" split.
        return dict(target_rows=8192, num_parts=2, in_buffers=2)
    # Unknown chip: conservative, single partition.
    return dict(target_rows=4096, num_parts=1, in_buffers=2)


def _mse_partial_kernel(x_ref, y_ref, o_ref, acc_ref, *,
                        valid_rows, inv_total, needs_mask, acc_rows):
    """Accumulate sum((x - y)^2) of one (block_rows, 128) tile into an
    (acc_rows, 128) f32 VMEM accumulator; the last inner step does one
    cross-lane reduce, applies the 1/N scale and writes this partition's
    (already-scaled) partial mean."""
    i = pl.program_id(1)
    block_rows = x_ref.shape[0]
    chunks = block_rows // acc_rows

    @pl.when(i == 0)
    def _():
        acc_ref[...] = jnp.zeros_like(acc_ref)

    d = x_ref[...].astype(jnp.float32) - y_ref[...].astype(jnp.float32)
    sq = d * d

    def _accumulate(vals):
        # (block_rows,128) -> (chunks, acc_rows, 128): layout-preserving
        # reshape; the axis-0 sum is vreg-wise VPU adds over `acc_rows//8`
        # independent accumulator vregs (no cross-lane traffic per step).
        acc_ref[...] += vals.reshape(chunks, acc_rows, _LANES).sum(axis=0)

    if needs_mask:
        gb = pl.program_id(0) * pl.num_programs(1) + i
        fully_valid = (gb + 1) * block_rows <= valid_rows

        @pl.when(fully_valid)
        def _():
            _accumulate(sq)

        @pl.when(jnp.logical_not(fully_valid))
        def _():
            # Only partial edge blocks and clamped duplicate blocks pay the
            # iota+compare+select. NOTE: the mask uses the UNCLAMPED gb while
            # the index_map clamps it, so garbage from Pallas edge-padding /
            # redundant duplicate blocks is provably discarded (select after
            # squaring, so even NaN/Inf garbage contributes exactly 0).
            row = lax.broadcasted_iota(jnp.int32, (block_rows, _LANES), 0)
            _accumulate(jnp.where(gb * block_rows + row < valid_rows, sq, 0.0))
    else:
        _accumulate(sq)

    @pl.when(i == pl.num_programs(1) - 1)
    def _():
        # Single XLU reduce per partition; fold the mean scale here so the
        # wrapper emits no follow-up scalar division.
        o_ref[0, 0] = jnp.sum(acc_ref[...]) * inv_total


def pallas_mse(x: jax.Array, y: jax.Array, *, block_rows=None, num_parts=None):
    """mean((x - y)**2) over all elements, computed in a Pallas TPU kernel.

    Matches torch.nn.MSELoss(reduction='mean')(x, y) semantics (f32
    accumulation, scalar f32 result). `block_rows` / `num_parts` override the
    chip-gated defaults (mainly for testing the edge/duplicate-block paths).
    """
    assert x.shape == y.shape, "MSELoss requires matching shapes"
    total_elems = int(x.size)
    assert 0 < total_elems < 2**31

    cfg = _chip_config()
    target_rows = cfg["target_rows"] if block_rows is None else int(block_rows)
    parts_pref = cfg["num_parts"] if num_parts is None else int(num_parts)
    in_buffers = cfg["in_buffers"]

    # Lane-dense (rows, 128) view of the flattened operands.
    xf = x.reshape(-1)
    yf = y.reshape(-1)
    rem = total_elems % _LANES
    if rem:
        # Rare: element count not a multiple of 128. Pad with zeros (exactly 0
        # contribution to the sum); at most 127 elements.
        pad = _LANES - rem
        xf = jnp.pad(xf, (0, pad))
        yf = jnp.pad(yf, (0, pad))
    rows = xf.size // _LANES
    x2d = xf.reshape(rows, _LANES)
    y2d = yf.reshape(rows, _LANES)

    # Block shape: full dim for small inputs, else the chip-sized tile
    # (multiple of 8 sublanes, so the (8,128) BlockSpec rule always holds).
    block = rows if rows <= target_rows else target_rows
    assert block == rows or block % _SUBLANES == 0

    total_blocks = pl.cdiv(rows, block)
    parts = max(1, min(parts_pref, total_blocks))
    blocks_per_part = pl.cdiv(total_blocks, parts)
    needs_mask = (rows % block != 0) or (total_blocks % parts != 0)

    # Accumulator depth: widest of 32/16/8 sublanes dividing the block; for
    # tiny full-dim blocks fall back to the block itself (single inner step).
    acc_rows = block
    for cand in (_ACC_ROWS, 16, _SUBLANES):
        if block % cand == 0:
            acc_rows = cand
            break

    def in_index_map(p, i):
        gb = p * blocks_per_part + i
        # Clamp fully-out-of-range duplicate blocks (uneven split across
        # partitions). The kernel masks their contribution to zero using the
        # unclamped gb, so clamping only affects which (valid) data gets
        # redundantly streamed, never the result.
        return (jnp.minimum(gb, total_blocks - 1), 0)

    kernel = functools.partial(
        _mse_partial_kernel,
        valid_rows=rows,
        inv_total=1.0 / float(total_elems),
        needs_mask=needs_mask,
        acc_rows=acc_rows)

    # Explicit VMEM budget: inputs (double/triple-buffered) + accumulator +
    # headroom for Mosaic internal scratch; >= 32 MiB, well under every chip's
    # physical VMEM (64 MiB on v7x, 128 MiB on v5e/v6e).
    in_block_bytes = block * _LANES * (
        jnp.dtype(x.dtype).itemsize + jnp.dtype(y.dtype).itemsize)
    vmem_limit = int(max(32 << 20, in_buffers * in_block_bytes + (12 << 20)))

    # Deeper buffering only pays off when there are enough inner steps.
    buffers = in_buffers if blocks_per_part >= in_buffers else 2
    spec_kwargs = {} if buffers == 2 else {"pipeline_mode": pl.Buffered(buffers)}
    in_spec = pl.BlockSpec((block, _LANES), in_index_map, **spec_kwargs)

    cost = pl.CostEstimate(
        flops=3 * total_elems,
        transcendentals=0,
        bytes_accessed=total_elems * (
            jnp.dtype(x.dtype).itemsize + jnp.dtype(y.dtype).itemsize)
        + 4 * parts,
    )

    partials = pl.pallas_call(
        kernel,
        out_shape=jax.ShapeDtypeStruct((parts, 1), jnp.float32),
        grid_spec=pltpu.PrefetchScalarGridSpec(
            num_scalar_prefetch=0,
            grid=(parts, blocks_per_part),
            in_specs=[in_spec,
                      pl.BlockSpec((block, _LANES), in_index_map, **spec_kwargs)],
            out_specs=pl.BlockSpec((1, 1), lambda p, i: (p, 0),
                                   memory_space=pltpu.SMEM),
            scratch_shapes=[pltpu.VMEM((acc_rows, _LANES), jnp.float32)],
        ),
        compiler_params=pltpu.CompilerParams(
            dimension_semantics=("parallel", "arbitrary"),
            vmem_limit_bytes=vmem_limit,
        ),
        cost_estimate=cost,
    )(x2d, y2d)

    # Partials are already scaled by 1/total_elems in-kernel.
    if parts == 1:
        return partials[0, 0]
    return jnp.sum(partials)


class SimpleLossWrapper:
    """JAX port of torchdistill SimpleLossWrapper with single_loss = MSE
    (computed by the Pallas kernel above). The dict plumbing is host-side
    Python, exactly as in the PyTorch module."""

    def __init__(self, single_loss, params_config):
        self.single_loss = single_loss
        input_config = params_config['input']
        self.is_input_from_teacher = input_config['is_from_teacher']
        self.input_module_path = input_config['module_path']
        self.input_key = input_config['io']
        target_config = params_config['target']
        self.is_target_from_teacher = target_config['is_from_teacher']
        self.target_module_path = target_config['module_path']
        self.target_key = target_config['io']

    @staticmethod
    def extract_value(io_dict, path, key):
        return io_dict[path][key]

    def forward(self, student_io_dict, teacher_io_dict, targets, *args, **kwargs):
        input_batch = self.extract_value(
            teacher_io_dict if self.is_input_from_teacher else student_io_dict,
            self.input_module_path, self.input_key)
        if self.target_module_path is None and self.target_key is None:
            target_batch = targets
        else:
            target_batch = self.extract_value(
                teacher_io_dict if self.is_target_from_teacher else student_io_dict,
                self.target_module_path, self.target_key)
        return self.single_loss(input_batch, target_batch, *args, **kwargs)

    __call__ = forward

    def __str__(self):
        return str(self.single_loss)


if __name__ == "__main__":
    key = jax.random.PRNGKey(0)
    k1, k2, k3, k4 = jax.random.split(key, 4)

    # Small NCHW-shaped activations: student output vs teacher output.
    B, C, H, W = 2, 4, 16, 16
    student_feat = jax.random.normal(k1, (B, C, H, W), dtype=jnp.float32)
    teacher_feat = jax.random.normal(k2, (B, C, H, W), dtype=jnp.float32)

    student_io_dict = {'backbone.layer4': {'output': student_feat}}
    teacher_io_dict = {'backbone.layer4': {'output': teacher_feat}}

    params_config = {
        'input': {'is_from_teacher': False,
                  'module_path': 'backbone.layer4', 'io': 'output'},
        'target': {'is_from_teacher': True,
                   'module_path': 'backbone.layer4', 'io': 'output'},
    }

    loss_wrapper = SimpleLossWrapper(pallas_mse, params_config)
    loss = jax.block_until_ready(
        loss_wrapper(student_io_dict, teacher_io_dict, targets=None))
    ref = jnp.mean((student_feat - teacher_feat) ** 2)
    assert jnp.allclose(loss, ref, rtol=1e-5, atol=1e-6), (loss, ref)

    # Multi-block path with a partial edge block, a forced 2-way partition
    # split with a clamped duplicate block, and in-kernel masking (small
    # shapes, tiling forced via overrides so this runs on any chip).
    a = jax.random.normal(k3, (2, 8, 33, 32), dtype=jnp.float32)   # 132 rows
    b = jax.random.normal(k4, (2, 8, 33, 32), dtype=jnp.float32)
    loss2 = jax.block_until_ready(pallas_mse(a, b, block_rows=64, num_parts=2))
    ref2 = jnp.mean((a - b) ** 2)
    assert jnp.allclose(loss2, ref2, rtol=1e-5, atol=1e-6), (loss2, ref2)

    # Element count not a multiple of 128: exercises the minimal zero-pad path
    # and a full-dim block whose rows are not a multiple of 8.
    k5, k6 = jax.random.split(k4)
    c = jax.random.normal(k5, (3, 5, 7, 11), dtype=jnp.float32)    # 1155 elems
    d = jax.random.normal(k6, (3, 5, 7, 11), dtype=jnp.float32)
    loss3 = jax.block_until_ready(pallas_mse(c, d))
    ref3 = jnp.mean((c - d) ** 2)
    assert jnp.allclose(loss3, ref3, rtol=1e-5, atol=1e-6), (loss3, ref3)

    print("KERNEL_OK")
</pallas_src>

<mosaic_0001>
module attributes {stable_mosaic.version = 11 : i64} {
  func.func @_mse_partial_kernel(%arg0: i32, %arg1: i32, %arg2: memref<16x128xf32, #tpu.memory_space<vmem>>, %arg3: memref<16x128xf32, #tpu.memory_space<vmem>>, %arg4: memref<1x1xf32, #tpu.memory_space<smem>>, %arg5: memref<16x128xf32, #tpu.memory_space<vmem>>) attributes {dimension_semantics = [#tpu.dimension_semantics<parallel>, #tpu.dimension_semantics<arbitrary>], iteration_bounds = array<i64: 1, 1>, scalar_prefetch = 0 : i64, scratch_operands = 1 : i64, tpu.core_type = #tpu.core_type<tc>, window_params = [{transform_indices = @transform_0, window_bounds = array<i64: 16, 128>}, {transform_indices = @transform_1, window_bounds = array<i64: 16, 128>}, {transform_indices = @transform_2, window_bounds = array<i64: 1, 1>}]} {
    %c0_i32 = arith.constant 0 : i32
    %0 = arith.cmpi eq, %arg1, %c0_i32 : i32
    %1 = arith.extui %0 : i1 to i32
    %c0_i32_0 = arith.constant 0 : i32
    %2 = arith.cmpi ne, %1, %c0_i32_0 : i32
    scf.if %2 {
      %cst_10 = arith.constant 0.000000e+00 : f32
      %15 = vector.broadcast %cst_10 : f32 to vector<16x128xf32>
      %c0_11 = arith.constant 0 : index
      %c0_12 = arith.constant 0 : index
      %16 = vector.load %arg5[%c0_11, %c0_12] : memref<16x128xf32, #tpu.memory_space<vmem>>, vector<16x128xf32>
      tpu.vector_store %arg5[%c0_11, %c0_12], %15 {strides = array<i32>} : memref<16x128xf32, #tpu.memory_space<vmem>>, vector<16x128xf32>,
    } else {
    }
    %c0 = arith.constant 0 : index
    %c0_1 = arith.constant 0 : index
    %3 = vector.load %arg2[%c0, %c0_1] : memref<16x128xf32, #tpu.memory_space<vmem>>, vector<16x128xf32>
    %c0_2 = arith.constant 0 : index
    %c0_3 = arith.constant 0 : index
    %4 = vector.load %arg3[%c0_2, %c0_3] : memref<16x128xf32, #tpu.memory_space<vmem>>, vector<16x128xf32>
    %5 = arith.subf %3, %4 : vector<16x128xf32>
    %6 = arith.mulf %5, %5 : vector<16x128xf32>
    %c0_4 = arith.constant 0 : index
    %c0_5 = arith.constant 0 : index
    %7 = vector.load %arg5[%c0_4, %c0_5] : memref<16x128xf32, #tpu.memory_space<vmem>>, vector<16x128xf32>
    %8 = vector.shape_cast %6 : vector<16x128xf32> to vector<1x16x128xf32>
    %cst = arith.constant dense<0.000000e+00> : vector<16x128xf32>
    %9 = vector.multi_reduction <add>, %8, %cst [0] : vector<1x16x128xf32> to vector<16x128xf32>
    %10 = arith.addf %7, %9 : vector<16x128xf32>
    %c0_6 = arith.constant 0 : index
    %c0_7 = arith.constant 0 : index
    %11 = vector.load %arg5[%c0_6, %c0_7] : memref<16x128xf32, #tpu.memory_space<vmem>>, vector<16x128xf32>
    tpu.vector_store %arg5[%c0_6, %c0_7], %10 {strides = array<i32>} : memref<16x128xf32, #tpu.memory_space<vmem>>, vector<16x128xf32>,
    %c0_i32_8 = arith.constant 0 : i32
    %12 = arith.cmpi eq, %arg1, %c0_i32_8 : i32
    %13 = arith.extui %12 : i1 to i32
    %c0_i32_9 = arith.constant 0 : i32
    %14 = arith.cmpi ne, %13, %c0_i32_9 : i32
    scf.if %14 {
      %c0_10 = arith.constant 0 : index
      %c0_11 = arith.constant 0 : index
      %15 = vector.load %arg5[%c0_10, %c0_11] : memref<16x128xf32, #tpu.memory_space<vmem>>, vector<16x128xf32>
      %16 = vector.shape_cast %15 : vector<16x128xf32> to vector<1x16x128xf32>
      %cst_12 = arith.constant dense<0.000000e+00> : vector<1xf32>
      %17 = vector.multi_reduction <add>, %16, %cst_12 [1, 2] : vector<1x16x128xf32> to vector<1xf32>
      %18 = vector.shape_cast %17 : vector<1xf32> to vector<1x1x1xf32>
      %19 = vector.extract %18[0, 0, 0] : f32 from vector<1x1x1xf32>
      %cst_13 = arith.constant 4.8828125E-4 : f32
      %20 = arith.mulf %19, %cst_13 : f32
      %c0_14 = arith.constant 0 : index
      %c0_15 = arith.constant 0 : index
      %21 = memref.load %arg4[%c0_14, %c0_15] : memref<1x1xf32, #tpu.memory_space<smem>>
      memref.store %20, %arg4[%c0_14, %c0_15] : memref<1x1xf32, #tpu.memory_space<smem>>
    } else {
    }
    return
  }
  func.func @transform_0(%arg0: i32, %arg1: i32) -> (i32, i32) {
    %c1_i32 = arith.constant 1 : i32
    %0 = arith.muli %arg0, %c1_i32 : i32
    %1 = arith.addi %0, %arg1 : i32
    %c0_i32 = arith.constant 0 : i32
    %2 = arith.minsi %1, %c0_i32 : i32
    %c0_i32_0 = arith.constant 0 : i32
    %c0_i32_1 = arith.constant 0 : i32
    return %2, %c0_i32_0 : i32, i32
  }
  func.func @transform_1(%arg0: i32, %arg1: i32) -> (i32, i32) {
    %c1_i32 = arith.constant 1 : i32
    %0 = arith.muli %arg0, %c1_i32 : i32
    %1 = arith.addi %0, %arg1 : i32
    %c0_i32 = arith.constant 0 : i32
    %2 = arith.minsi %1, %c0_i32 : i32
    %c0_i32_0 = arith.constant 0 : i32
    %c0_i32_1 = arith.constant 0 : i32
    return %2, %c0_i32_0 : i32, i32
  }
  func.func @transform_2(%arg0: i32, %arg1: i32) -> (i32, i32) {
    %c0_i32 = arith.constant 0 : i32
    %c0_i32_0 = arith.constant 0 : i32
    return %arg0, %c0_i32 : i32, i32
  }
}

</mosaic_0001>

<bundles_post_ra>
// kernel: tpu_custom_call.1
= control target key start
LH: loop header
LB: loop body
LE: loop exit
PB: predicated region body
PF: predicated region fallthrough
CT: control target
= control target key end

     0   :  { %7 = vsyncpa [#allocation4], 0  ;;  %s227_s0 = inlined_call_operand.hbm [shape: f32[16,128], index: 0, kind: input, shape index: {}]   ;;  %s228_s1 = inlined_call_operand.hbm [shape: f32[16,128], index: 1, kind: input, shape index: {}]   ;;  %s229_s2 = inlined_call_operand.hbm [shape: f32[1,1], index: 2, kind: output, shape index: {}]  }
   0x1   :  { %8 = vsyncpa [#allocation7], 0 }
   0x2   :  { %9 = vsyncpa [#allocation5], 0  ;;  %s20_s11 = sshll.u32 %s227_s0, 4  ;;  %s198_s12 = smov [#allocation3]   ;;  %s21_s11 = int_to_ptr.hbm [resolvable:$true] %s20_s11 }
   0x3   :  { %s22_s13 = sshll.u32 %s198_s12, 4  ;;  %s39_s16 = sshll.u32 %s228_s1, 4  ;;  %s23_s13 = int_to_ptr.vmem [resolvable:$true] %s22_s13  ;;  %s40_s16 = int_to_ptr.hbm [resolvable:$true] %s39_s16 }
   0x4   :  { %s199_s17 = smov 128   ;;  %s200_s18 = smov 8  }
   0x5   :  { %28 = dma.hbm_to_vmem [thread:$0]  %s21_s11, 256, %s23_s13, [#allocation4], %s199_s17, %s199_s17, %s200_s18  }
   0x6   :  { %s201_s19 = smov [#allocation6]  }
   0x7   :  { %s41_s20 = sshll.u32 %s201_s19, 4  ;;  %s42_s20 = int_to_ptr.vmem [resolvable:$true] %s41_s20 }
   0x8   :  { %47 = dma.hbm_to_vmem [thread:$0]  %s40_s16, 256, %s42_s20, [#allocation7], %s199_s17, %s199_s17, %s200_s18  }
   0x9   :  { %192 = dma.done.wait [#allocation4], 256  }
   0xa   :  { %193 = vsyncadd [#allocation4], 4294967040 }
   0xb   :  { %194 = dma.done.wait [#allocation7], 256  }
   0xc   :  { %195 = vsyncadd [#allocation7], 4294967040  ;;  %v70_v0 = vld [vmem:[#allocation3] sm:$0xff]  ;;  %v71_v1 = vld [vmem:[#allocation3 + $0x8] sm:$0xff]  ;;  %s109_s21 = sshll.u32 %s229_s2, 4  ;;  %s202_s24 = smov [#allocation8]   ;;  %s110_s21 = int_to_ptr.hbm [resolvable:$true] %s109_s21 }
   0xd   :  { %v72_v2 = vld [vmem:[#allocation6] sm:$0xff]  ;;  %v73_v3 = vld [vmem:[#allocation6 + $0x8] sm:$0xff] }
   0xe   :  { %v74_v4 = vsub.f32 %v70_v0, %v72_v2  ;;  %v75_v5 = vsub.f32 %v71_v1, %v73_v3 }
  0x10   :  { %v76_v6 = vmul.f32 %v74_v4, %v74_v4  ;;  %v77_v7 = vmul.f32 %v75_v5, %v75_v5 }
  0x12   :  { %v91_v8 = vadd.f32 %v77_v7, %v76_v6 }
  0x14   :  { %92 = vadd.xlane.f32.xlu0 %v91_v8 }
  0x87   :  { %v93_v9 = vpop.xlane.xlu0 %92 }
  0x88   :  { %v94_v10 = vrot.slane %v93_v9, 4 }
  0x8a   :  { %v95_v11 = vadd.f32 %v94_v10, %v93_v9 }
  0x8c   :  { %v96_v12 = vrot.slane %v95_v11, 2 }
  0x8e   :  { %v97_v13 = vadd.f32 %v96_v12, %v95_v11 }
  0x90   :  { %v98_v14 = vrot.slane %v97_v13, 1 }
  0x92   :  { %v99_v15 = vadd.f32 %v98_v14, %v97_v13 }
  0x94   :  { %125 = vpush %v99_v15 }
  0xc5   :  { %s126_s22 = spop %125 }
  0xc6   :  { %s101_s23 = smul.f32 0.00048828125, %s126_s22 }
  0xc8   :  { %103 = sst [smem:[#allocation8]] %s101_s23 }
  0xc9   :  { %112 = dma.smem_to_hbm %s202_s24, 16, %s110_s21, [#allocation5]  }
  0xca   :  { %196 = dma.done.wait [#allocation5], 16  }
  0xcb   :  { %197 = vsyncadd [#allocation5], 4294967280 }
  0xcc   :  { %117 = sfence }
  0xcd   :  { %118 = vsyncpa [#allocation4], 1 }
  0xce   :  { %119 = vsyncpa [#allocation7], 1 }
  0xcf   :  { %120 = vsyncpa [#allocation5], 1 }

</bundles_post_ra>
